<compile_context>
chip_gen: v6e
topology: v6e:2x2x1
jax: 0.10.0
libtpu: 0.0.40
codegen_flags: <defaults>
</compile_context>

<pallas_src>
import jax
import jax.numpy as jnp
from jax.experimental import pallas as pl
from jax.experimental.pallas import tpu as pltpu


_LANE = 128
# Per-grid-step lane width for large inputs: 4096 f32 lanes * ~6 resident rows
# (x, p, 2x bits, 2x out) * double buffering is well under the 32 MiB scoped
# VMEM default and v7x's 64 MiB physical VMEM.
_MAX_BLOCK_LANES = 4096


def _dropout_pair_kernel(x_ref, p_ref, bits_ref, o_ref):
    """Two independent dropout applications of x with per-element prob p.

    x_ref, p_ref : (1, block) float32
    bits_ref     : (2, block) uint32  (row 0 -> mask for x3, row 1 -> x4)
    o_ref        : (2, block)         (row 0 -> x3, row 1 -> x4)
    """
    x = x_ref[...].astype(jnp.float32)
    p = jnp.clip(p_ref[...].astype(jnp.float32), 0.0, 1.0)

    # Keep the rescale finite even when p == 1 (those lanes are zeroed below).
    p_safe = jnp.minimum(p, 1.0 - 2.0 ** -24)
    # NOTE: on a real-size hot path this would be pl.reciprocal(1 - p, approx=True)
    # (EUP slot); plain division is kept here for interpret-mode portability and
    # is computed once per (1, block) row, shared by both output rows.
    scale = 1.0 / (1.0 - p_safe)
    xs = x * scale                              # hoisted once, reused for both rows

    # Integer-domain threshold: keep element iff bits >= floor(p * 2^32), p < 1.
    # 4294967040.0 == 2^32 - 256 is the largest float32 below 2^32 (avoids u32
    # overflow); exact p == 1 is handled by the explicit p < 1 gate.
    thresh = jnp.minimum(p * 4294967296.0, 4294967040.0).astype(jnp.uint32)
    keep_ok = p < 1.0                           # torch: p == 1 -> all zeros

    bits = bits_ref[...]                        # (2, block) uint32, one slab
    keep = (bits >= thresh) & keep_ok           # broadcast (1,block) -> (2,block)

    # Single fused lane-dense store for both outputs.
    o_ref[...] = jnp.where(keep, xs, 0.0).astype(o_ref.dtype)


def model_forward(x1, x2, key):
    """Reproduces Model.forward(x1, x2) -> (x3, x4)."""
    assert x1.shape == x2.shape
    orig_shape = x1.shape
    out_dtype = x1.dtype
    n = int(x1.size)

    # Lane-dense flattening: pad the flattened length to a multiple of 128 so the
    # fused (2, block) output is written with full-lane (unmasked) stores.
    if n <= _MAX_BLOCK_LANES:
        block = max(_LANE, pl.cdiv(n, _LANE) * _LANE)
    else:
        block = _MAX_BLOCK_LANES
    n_pad = pl.cdiv(n, block) * block
    grid = (n_pad // block,)

    pad = n_pad - n
    x_flat = jnp.pad(x1.reshape(-1).astype(jnp.float32), (0, pad)).reshape(1, n_pad)
    p_flat = jnp.pad(x2.reshape(-1).astype(jnp.float32), (0, pad)).reshape(1, n_pad)

    # One PRNG draw for both masks, generated outside the kernel (stateless JAX
    # PRNG): deterministic, tiling-invariant, and runs under the CPU interpreter
    # where pltpu.prng_* has no lowering.
    bits = jax.random.bits(key, (2, n_pad), dtype=jnp.uint32)

    out = pl.pallas_call(
        _dropout_pair_kernel,
        out_shape=jax.ShapeDtypeStruct((2, n_pad), out_dtype),
        grid=grid,
        in_specs=[
            pl.BlockSpec((1, block), lambda i: (0, i)),   # x
            pl.BlockSpec((1, block), lambda i: (0, i)),   # p
            pl.BlockSpec((2, block), lambda i: (0, i)),   # random bits (both masks)
        ],
        out_specs=pl.BlockSpec((2, block), lambda i: (0, i)),
        compiler_params=pltpu.CompilerParams(
            dimension_semantics=("parallel",),            # lets v7x shard over 2 TCs
        ),
    )(x_flat, p_flat, bits)

    x3 = out[0, :n].reshape(orig_shape).astype(out_dtype)
    x4 = out[1, :n].reshape(orig_shape).astype(out_dtype)
    return x3, x4


if __name__ == "__main__":
    key = jax.random.PRNGKey(0)
    k1, k2, k3 = jax.random.split(key, 3)
    # Shapes consistent with the module's example inputs: (1, 2, 2)
    x1 = jax.random.normal(k1, (1, 2, 2), dtype=jnp.float32)
    x2 = jax.random.normal(k2, (1, 2, 2), dtype=jnp.float32)

    x3, x4 = model_forward(x1, x2, k3)
    jax.block_until_ready((x3, x4))

    assert x3.shape == x1.shape and x4.shape == x1.shape
    assert x3.dtype == x1.dtype and x4.dtype == x1.dtype
    print("KERNEL_OK")
</pallas_src>

<mosaic_0001>
module attributes {stable_mosaic.version = 11 : i64} {
  func.func @_dropout_pair_kernel(%arg0: i32, %arg1: memref<1x128xf32, #tpu.memory_space<vmem>>, %arg2: memref<1x128xf32, #tpu.memory_space<vmem>>, %arg3: memref<2x128xi32, #tpu.memory_space<vmem>>, %arg4: memref<2x128xf32, #tpu.memory_space<vmem>>) attributes {dimension_semantics = [#tpu.dimension_semantics<parallel>], iteration_bounds = array<i64: 1>, scalar_prefetch = 0 : i64, scratch_operands = 0 : i64, tpu.core_type = #tpu.core_type<tc>, window_params = [{transform_indices = @transform_0, window_bounds = array<i64: 1, 128>}, {transform_indices = @transform_1, window_bounds = array<i64: 1, 128>}, {transform_indices = @transform_2, window_bounds = array<i64: 2, 128>}, {transform_indices = @transform_3, window_bounds = array<i64: 2, 128>}]} {
    %c0 = arith.constant 0 : index
    %c0_0 = arith.constant 0 : index
    %0 = vector.load %arg1[%c0, %c0_0] : memref<1x128xf32, #tpu.memory_space<vmem>>, vector<1x128xf32>
    %c0_1 = arith.constant 0 : index
    %c0_2 = arith.constant 0 : index
    %1 = vector.load %arg2[%c0_1, %c0_2] : memref<1x128xf32, #tpu.memory_space<vmem>>, vector<1x128xf32>
    %cst = arith.constant 0.000000e+00 : f32
    %cst_3 = arith.constant 1.000000e+00 : f32
    %2 = vector.broadcast %cst : f32 to vector<1x128xf32>
    %3 = arith.maximumf %2, %1 : vector<1x128xf32>
    %4 = vector.broadcast %cst_3 : f32 to vector<1x128xf32>
    %5 = arith.minimumf %4, %3 : vector<1x128xf32>
    %cst_4 = arith.constant 0.99999994 : f32
    %6 = vector.broadcast %cst_4 : f32 to vector<1x128xf32>
    %7 = arith.minimumf %5, %6 : vector<1x128xf32>
    %cst_5 = arith.constant 1.000000e+00 : f32
    %8 = vector.broadcast %cst_5 : f32 to vector<1x128xf32>
    %9 = arith.subf %8, %7 : vector<1x128xf32>
    %cst_6 = arith.constant 1.000000e+00 : f32
    %10 = vector.broadcast %cst_6 : f32 to vector<1x128xf32>
    %11 = arith.divf %10, %9 : vector<1x128xf32>
    %12 = arith.mulf %0, %11 : vector<1x128xf32>
    %cst_7 = arith.constant 4.2949673E+9 : f32
    %13 = vector.broadcast %cst_7 : f32 to vector<1x128xf32>
    %14 = arith.mulf %5, %13 : vector<1x128xf32>
    %cst_8 = arith.constant 4.29496704E+9 : f32
    %15 = vector.broadcast %cst_8 : f32 to vector<1x128xf32>
    %16 = arith.minimumf %14, %15 : vector<1x128xf32>
    %17 = arith.fptoui %16 : vector<1x128xf32> to vector<1x128xi32>
    %cst_9 = arith.constant 1.000000e+00 : f32
    %18 = vector.broadcast %cst_9 : f32 to vector<1x128xf32>
    %19 = arith.cmpf olt, %5, %18 : vector<1x128xf32>
    %c0_10 = arith.constant 0 : index
    %c0_11 = arith.constant 0 : index
    %20 = vector.load %arg3[%c0_10, %c0_11] : memref<2x128xi32, #tpu.memory_space<vmem>>, vector<2x128xi32>
    %21 = vector.broadcast %17 : vector<1x128xi32> to vector<2x128xi32>
    %22 = arith.cmpi uge, %20, %21 : vector<2x128xi32>
    %23 = vector.broadcast %19 : vector<1x128xi1> to vector<2x128xi1>
    %24 = arith.andi %22, %23 : vector<2x128xi1>
    %cst_12 = arith.constant 0.000000e+00 : f32
    %25 = vector.shape_cast %12 : vector<1x128xf32> to vector<1x128xf32>
    %26 = vector.broadcast %25 : vector<1x128xf32> to vector<2x128xf32>
    %27 = vector.broadcast %cst_12 : f32 to vector<2x128xf32>
    %28 = arith.select %24, %26, %27 : vector<2x128xi1>, vector<2x128xf32>
    %c0_13 = arith.constant 0 : index
    %c0_14 = arith.constant 0 : index
    %29 = vector.load %arg4[%c0_13, %c0_14] : memref<2x128xf32, #tpu.memory_space<vmem>>, vector<2x128xf32>
    tpu.vector_store %arg4[%c0_13, %c0_14], %28 {strides = array<i32>} : memref<2x128xf32, #tpu.memory_space<vmem>>, vector<2x128xf32>,
    return
  }
  func.func @transform_0(%arg0: i32) -> (i32, i32) {
    %c0_i32 = arith.constant 0 : i32
    %c0_i32_0 = arith.constant 0 : i32
    return %c0_i32, %arg0 : i32, i32
  }
  func.func @transform_1(%arg0: i32) -> (i32, i32) {
    %c0_i32 = arith.constant 0 : i32
    %c0_i32_0 = arith.constant 0 : i32
    return %c0_i32, %arg0 : i32, i32
  }
  func.func @transform_2(%arg0: i32) -> (i32, i32) {
    %c0_i32 = arith.constant 0 : i32
    %c0_i32_0 = arith.constant 0 : i32
    return %c0_i32, %arg0 : i32, i32
  }
  func.func @transform_3(%arg0: i32) -> (i32, i32) {
    %c0_i32 = arith.constant 0 : i32
    %c0_i32_0 = arith.constant 0 : i32
    return %c0_i32, %arg0 : i32, i32
  }
}

</mosaic_0001>

<bundles_post_ra>
// kernel: tpu_custom_call.1
= control target key start
LH: loop header
LB: loop body
LE: loop exit
PB: predicated region body
PF: predicated region fallthrough
CT: control target
= control target key end

     0   :  { %8 = vsyncpa [#allocation3], 0  ;;  %s170_s0 = inlined_call_operand.hbm [shape: f32[1,128], index: 0, kind: input, shape index: {}]   ;;  %s171_s1 = inlined_call_operand.vmem [shape: f32[1,128], index: 1, kind: input, shape index: {}]   ;;  %s172_s2 = inlined_call_operand.vmem [shape: u32[2,128], index: 2, kind: input, shape index: {}]   ;;  %s173_s3 = inlined_call_operand.hbm [shape: f32[2,128], index: 3, kind: output, shape index: {}]  }
   0x1   :  { %9 = vsyncpa [#allocation4], 0  ;;  %s135_s12 = smov [#allocation2]  }
   0x2   :  { %s16_s13 = sshll.u32 %s135_s12, 4  ;;  %s17_s13 = int_to_ptr.vmem [resolvable:$true] %s16_s13 }
   0x3   :  { %s99_s14 = scalar_lea.vmem %s17_s13, 16  ;;  %s103_s15 = scalar_lea.vmem %s17_s13, 32 }
   0x4   :  { %p100_p0 = scmp.ne.s32.totalorder %s17_s13, %s99_s14  ;;  %p104_p1 = scmp.lt.s32.totalorder %s17_s13, %s17_s13 }
   0x5   :  { %p105_p2 = scmp.lt.s32.totalorder %s103_s15, %s99_s14 }
   0x7   :  { %p106_p3 = por %p105_p2, %p104_p1 }
   0x9   :  { %p107_p4 = pnand %p106_p3, %p100_p0 }
   0xb   :  { %110 = shalt.err (!%p107_p4)
}
   0xc   :  { %19 = dma.hbm_to_vmem [thread:$0]  %s170_s0, 16, %s17_s13, [#allocation3]  }
   0xd   :  { %131 = dma.done.wait [#allocation3], 16  }
   0xe   :  { %132 = vsyncadd [#allocation3], 4294967280  ;;  %v28_v0 = vld [vmem:[%s171_s1] sm:$0x1]  ;;  %v49_v5 = vlaneseq  ;;  %v136_v14 = vmov 0   ;;  %s137_s20 = smov [#allocation5]  }
   0xf   :  { %v29_v1 = vmax.f32 %v28_v0, 0.0  ;;  %v48_v21 = vld [vmem:[%s172_s2] sm:$0x3]  ;;  %s75_s21 = sshll.u32 %s137_s20, 4  ;;  %s76_s21 = int_to_ptr.vmem [resolvable:$true] %s75_s21 }
  0x10   :  { %v50_v9 = vshrl.u32 %v49_v5, 7  ;;  %v27_v22 = vld [vmem:[#allocation2] sm:$0x1]  ;;  %s111_s22 = scalar_lea.vmem %s76_s21, 32  ;;  %p116_p6 = scmp.lt.s32.totalorder %s76_s21, %s76_s21 }
  0x11   :  { %v30_v2 = vmin.f32 %v29_v1, 1.0  ;;  %p112_p5 = scmp.ne.s32.totalorder %s76_s21, %s111_s22  ;;  %p117_p7 = scmp.lt.s32.totalorder %s111_s22, %s111_s22 }
  0x12   :  { %v51_v13 = vsub.s32 0, %v50_v9 }
  0x13   :  { %v31_v3 = vmin.f32 %v30_v2, 0.99999994  ;;  %v36_v4 = vmul.f32 4.2949673e+09, %v30_v2  ;;  %vm47_vm0 = vcmp.lt.f32.partialorder %v30_v2, 1.0  ;;  %p118_p8 = por %p117_p7, %p116_p6 }
  0x14   :  { %v54_v15 = vsel %vm47_vm0, 1, %v136_v14 }
  0x15   :  { %v32_v6 = vsub.f32 1.0, %v31_v3  ;;  %v37_v7 = vmin.f32 %v36_v4, 4.294967e+09  ;;  %v58_v19 = vrot.slane %v54_v15, %v51_v13  ;;  %p119_p9 = pnand %p118_p8, %p112_p5 }
  0x17   :  { %89 = vrcp.f32 %v32_v6  ;;  %v38_v8 = vmax.f32 %v37_v7, 0.0  ;;  %vm59_vm2 = vcmp.eq.s32.totalorder %v58_v19, 1 }
  0x19   :  { %v84_v10 = vadd.f32 -2.1474836e+09, %v38_v8  ;;  %v43_v11 = vtrunc.f32 %v38_v8  ;;  %vm45_vm1 = vcmp.ge.f32.partialorder %v38_v8, 2.1474836e+09 }
  0x1b   :  { %v40_v12 = vtrunc.f32 %v84_v10  ;;  %v44_v17 = vcvt.f32.s32 %v43_v11 }
  0x1d   :  { %v41_v16 = vcvt.f32.s32 %v40_v12 }
  0x1f   :  { %v85_v18 = vxor.u32 2147483648, %v41_v16 }
  0x21   :  { %v46_v20 = vsel %vm45_vm1, %v85_v18, %v44_v17 }
  0x22   :  { %v52_v23 = vrot.slane %v46_v20, %v51_v13 }
  0x24   :  { %v90_v24 = vpop.eup %89  ;;  %vm53_vm3 = vcmp.ge.u32.totalorder %v48_v21, %v52_v23 }
  0x25   :  { %v35_v25 = vmul.f32 %v90_v24, %v27_v22  ;;  %vm60_vm4 = vmand %vm53_vm3, %vm59_vm2 }
  0x27   :  { %v65_v26 = vrot.slane %v35_v25, %v51_v13 }
  0x29   :  { %v67_v27 = vsel %vm60_vm4, %v65_v26, 0.0 }
  0x2a   :  { %68 = vst [vmem:[#allocation5] sm:$0x3] %v67_v27 }
  0x2b   :  { %122 = shalt.err (!%p119_p9)
}
  0x2c   :  { %78 = dma.vmem_to_hbm [thread:$0]  %s76_s21, 32, %s173_s3, [#allocation4]  }
  0x2d   :  { %133 = dma.done.wait [#allocation4], 32  }
  0x2e   :  { %134 = vsyncadd [#allocation4], 4294967264 }
  0x2f   :  { %82 = vsyncpa [#allocation3], 1 }
  0x30   :  { %83 = vsyncpa [#allocation4], 1 }

</bundles_post_ra>
